<compile_context>
chip_gen: v5e
topology: v5e:2x2
jax: 0.10.0
libtpu: 0.0.40
codegen_flags: <defaults>
</compile_context>

<pallas_src>
import jax
import jax.numpy as jnp
from jax.experimental import pallas as pl
from jax.experimental.pallas import tpu as pltpu


def _round_up(x: int, m: int) -> int:
    return ((x + m - 1) // m) * m


def _choose_tile(n: int, tile_n: int, quantum: int = 16, min_tiles: int = 4) -> int:
    """Balanced node tiles: bounded by tile_n, multiple of `quantum` (even, so
    two-nodes-per-row packing works and bf16 sublane tiling is happy), and at
    least `min_tiles` grid steps when N allows so the 'parallel' axis can
    shard across both TensorCores on v7x.  Balancing bounds the padded tail to
    <quantum rows per tile instead of up-to-(tile-1) rows."""
    n_q = _round_up(max(int(n), 1), quantum)
    max_tiles = n_q // quantum
    want = max(pl.cdiv(n_q, int(tile_n)), min(min_tiles, max_tiles), 1)
    return _round_up(pl.cdiv(n_q, want), quantum)


def _tree_lstm_level_kernel(x_ref, hs_ref, c_ref, w_ref, u_ref, b_ref, out_ref):
    """One node-tile of the child-sum TreeLSTM cell.

    x_ref:   [TN, E3]     node embeddings                     (f32)
    hs_ref:  [TN, H]      sum of children hidden states       (f32)
    c_ref:   [TN, H]      aggregated children cell state      (f32)
    w_ref:   [E3, 4H]     input->gates weights, order i|o|u|f (matmul dtype)
    u_ref:   [H, 4H]      hidden->gates weights               (matmul dtype)
    b_ref:   [1, 4H]      bias                                (f32)
    out_ref: [TN//2, 4H]  lane-dense packed output:
                          row r = [h(r) | c(r) | h(half+r) | c(half+r)]
    """
    H = c_ref.shape[-1]
    half = out_ref.shape[0]

    # Two small MXU pushes (K=48 / K=32); the MXU has huge slack so no wrapper
    # concat pass is spent fusing them.  Node tiles are cast to the matmul
    # dtype in VMEM (free-ish); the HBM streams stay in the caller's dtype.
    gates = (
        jnp.dot(x_ref[...].astype(w_ref.dtype), w_ref[...],
                preferred_element_type=jnp.float32)
        + jnp.dot(hs_ref[...].astype(u_ref.dtype), u_ref[...],
                  preferred_element_type=jnp.float32)
        + b_ref[...])                                           # [TN, 4H] f32

    # Transcendentals once at full 4H=128 lane width (EUP slot); cheap slices.
    sg = jax.nn.sigmoid(gates)
    th = jnp.tanh(gates)
    i_g = sg[:, 0 * H:1 * H]
    o_g = sg[:, 1 * H:2 * H]
    u_g = th[:, 2 * H:3 * H]
    f_g = sg[:, 3 * H:4 * H]

    c_new = i_g * u_g + f_g * c_ref[...]          # [TN, H]  new structure_c
    h_new = o_g * jnp.tanh(c_new)                 # [TN, H]  node_encode

    # Pack two nodes per output row -> 128 lanes: one unmasked vst per node
    # pair and a lane-dense HBM writeback (no 2x padding of a 64-wide slab).
    out_ref[...] = jnp.concatenate(
        [h_new[:half], c_new[:half], h_new[half:], c_new[half:]], axis=-1)


def tree_lstm_level_encoder(embed, structure_sum, structure_c, graph_id,
                            num_graphs, params, readout=True,
                            tile_n=1024, matmul_dtype=jnp.bfloat16):
    """Pallas-backed forward of TreeLSTMLevelEncoder.

    embed:          [N, 3*embedding_size]        (unsqueeze(1)/squeeze(1) is a
                                                   no-op seq dim of 1)
    structure_sum:  [N, 2*graph_embedding_size]  sum of children hidden states
    structure_c:    [N, 2*graph_embedding_size]  aggregated children cell state
    graph_id:       [N] int32 node -> graph index (for the sum readout)
    Returns (graph_mu, graph_logvar, node_encode, last_c).
    """
    N = embed.shape[0]
    E3 = embed.shape[-1]
    H = structure_sum.shape[-1]

    tile = _choose_tile(N, tile_n)
    half = tile // 2
    grid_n = pl.cdiv(N, tile)
    n_pad = grid_n * tile

    # Weights are tiny and stay resident; casting them once is free.  The bias
    # is added in f32 after the matmul; structure_c is never downcast.
    W = jnp.asarray(params["W"], matmul_dtype).reshape(E3, 4 * H)
    U = jnp.asarray(params["U"], matmul_dtype).reshape(H, 4 * H)
    b = jnp.asarray(params["b"], jnp.float32).reshape(1, 4 * H)

    # Explicit VMEM budget: resident weights (double-buffered), double-buffered
    # node/output tiles, plus the [tile, 4H] gate / sigmoid / tanh / h / c
    # intermediates counted explicitly (generous factor), under v7x's 64 MiB.
    wsize = jnp.dtype(matmul_dtype).itemsize
    vmem_bytes = (
        2 * (E3 + H) * 4 * H * wsize + 2 * 4 * H * 4          # weights + bias
        + 2 * tile * (E3 + 2 * H) * 4                         # input tiles
        + 2 * half * 4 * H * 4                                # output tiles
        + 8 * tile * 4 * H * 4                                # intermediates
        + (2 << 20))                                          # headroom
    compiler_params = pltpu.CompilerParams(
        dimension_semantics=("parallel",),
        vmem_limit_bytes=int(min(max(vmem_bytes, 16 << 20), 56 << 20)))

    packed = pl.pallas_call(
        _tree_lstm_level_kernel,
        out_shape=jax.ShapeDtypeStruct((grid_n * half, 4 * H), jnp.float32),
        grid=(grid_n,),
        in_specs=[
            pl.BlockSpec((tile, E3), lambda i: (i, 0)),     # embed tile
            pl.BlockSpec((tile, H), lambda i: (i, 0)),      # structure_sum tile
            pl.BlockSpec((tile, H), lambda i: (i, 0)),      # structure_c tile
            pl.BlockSpec((E3, 4 * H), lambda i: (0, 0)),    # W, resident
            pl.BlockSpec((H, 4 * H), lambda i: (0, 0)),     # U, resident
            pl.BlockSpec((1, 4 * H), lambda i: (0, 0)),     # bias, resident
        ],
        out_specs=pl.BlockSpec((half, 4 * H), lambda i: (i, 0)),
        compiler_params=compiler_params,
    )(embed, structure_sum, structure_c, W, U, b)

    # Un-pack two-nodes-per-row: block i, row r holds node (i*tile + r) in
    # lanes [:2H] and node (i*tile + half + r) in lanes [2H:].  Padded tail
    # rows (garbage) are sliced off before any reduction.
    hc = (packed.reshape(grid_n, half, 2, 2 * H)
                .transpose(0, 2, 1, 3)
                .reshape(n_pad, 2 * H))[:N]
    h = hc[:, :H]            # node_encode
    last_c = hc[:, H:]       # new structure_c

    if readout:
        # dgl.readout_nodes(g, 'node_encode') == per-graph sum over nodes.
        graph_encode = jax.ops.segment_sum(h, graph_id, num_segments=num_graphs)
    else:
        graph_encode = h
    mu, logvar = jnp.split(graph_encode, 2, axis=-1)
    if readout:
        logvar = jnp.tanh(logvar)
    return mu, logvar, h, last_c


# ----------------------------- references ----------------------------------

def _cell_tail(gates, structure_c, graph_id, num_graphs):
    H = structure_c.shape[-1]
    i = jax.nn.sigmoid(gates[:, 0 * H:1 * H])
    o = jax.nn.sigmoid(gates[:, 1 * H:2 * H])
    u = jnp.tanh(gates[:, 2 * H:3 * H])
    f = jax.nn.sigmoid(gates[:, 3 * H:4 * H])
    c = i * u + f * structure_c
    h = o * jnp.tanh(c)
    g = jax.ops.segment_sum(h, graph_id, num_segments=num_graphs)
    mu, logvar = jnp.split(g, 2, axis=-1)
    return mu, jnp.tanh(logvar), h, c


def _reference_natural(embed, structure_sum, structure_c, graph_id,
                       num_graphs, params):
    """Plain-JAX, f32 reference (independent semantics check)."""
    gates = embed @ params["W"] + structure_sum @ params["U"] + params["b"]
    return _cell_tail(gates, structure_c, graph_id, num_graphs)


def _reference_matmul_dtype(embed, structure_sum, structure_c, graph_id,
                            num_graphs, params, matmul_dtype):
    """Mirrors the kernel's (optionally bf16) matmul preprocessing."""
    W = jnp.asarray(params["W"], matmul_dtype)
    U = jnp.asarray(params["U"], matmul_dtype)
    gates = (jnp.dot(embed.astype(matmul_dtype), W,
                     preferred_element_type=jnp.float32)
             + jnp.dot(structure_sum.astype(matmul_dtype), U,
                       preferred_element_type=jnp.float32)
             + jnp.asarray(params["b"], jnp.float32))
    return _cell_tail(gates, structure_c, graph_id, num_graphs)


if __name__ == "__main__":
    # Small config consistent with the module:
    #   embedding_size = 16        -> TreeLSTM input  = 3*16 = 48
    #   graph_embedding_size = 16  -> TreeLSTM hidden = 2*16 = 32 (mu/logvar 16)
    embedding_size = 16
    graph_embedding_size = 16
    E3 = embedding_size * 3            # 48
    H = graph_embedding_size * 2       # 32
    N = 48                             # total nodes in the batched graph
    B = 2                              # number of graphs (sizes 20 and 28)

    key = jax.random.PRNGKey(0)
    k = jax.random.split(key, 6)

    embed = jax.random.normal(k[0], (N, E3), jnp.float32)
    structure_sum = jax.random.normal(k[1], (N, H), jnp.float32)
    structure_c = jax.random.normal(k[2], (N, H), jnp.float32)

    # node -> graph ids (graph 0: nodes 0..19, graph 1: 20..47)
    graph_id = jnp.concatenate(
        [jnp.zeros(20, jnp.int32), jnp.ones(N - 20, jnp.int32)])

    # Deterministic TreeLSTM parameters (gate layout i|o|u|f along lanes).
    params = {
        "W": 0.1 * jax.random.normal(k[3], (E3, 4 * H), jnp.float32),
        "U": 0.1 * jax.random.normal(k[4], (H, 4 * H), jnp.float32),
        "b": 0.1 * jax.random.normal(k[5], (1, 4 * H), jnp.float32),
    }

    # ---- f32 path: strict check against the independent reference ----------
    mu, logvar, node_encode, last_c = tree_lstm_level_encoder(
        embed, structure_sum, structure_c, graph_id, B, params,
        readout=True, matmul_dtype=jnp.float32)
    jax.block_until_ready((mu, logvar, node_encode, last_c))

    r_mu, r_lv, r_h, r_c = _reference_natural(
        embed, structure_sum, structure_c, graph_id, B, params)
    assert jnp.allclose(mu, r_mu, atol=2e-4), "mu mismatch (f32)"
    assert jnp.allclose(logvar, r_lv, atol=2e-4), "logvar mismatch (f32)"
    assert jnp.allclose(node_encode, r_h, atol=2e-4), "node_encode mismatch (f32)"
    assert jnp.allclose(last_c, r_c, atol=2e-4), "last_c mismatch (f32)"
    assert mu.shape == (B, graph_embedding_size)
    assert logvar.shape == (B, graph_embedding_size)

    # ---- default bf16 matmul path: check against the matching reference ----
    b_mu, b_lv, b_h, b_c = tree_lstm_level_encoder(
        embed, structure_sum, structure_c, graph_id, B, params, readout=True)
    jax.block_until_ready((b_mu, b_lv, b_h, b_c))
    f_mu, f_lv, f_h, f_c = _reference_matmul_dtype(
        embed, structure_sum, structure_c, graph_id, B, params, jnp.bfloat16)
    assert jnp.allclose(b_mu, f_mu, atol=5e-3), "mu mismatch (bf16)"
    assert jnp.allclose(b_lv, f_lv, atol=5e-3), "logvar mismatch (bf16)"
    assert jnp.allclose(b_h, f_h, atol=5e-3), "node_encode mismatch (bf16)"
    assert jnp.allclose(b_c, f_c, atol=5e-3), "last_c mismatch (bf16)"

    # readout=False branch: per-node (mu, logvar), no tanh on logvar.
    n_mu, n_lv, _, _ = tree_lstm_level_encoder(
        embed, structure_sum, structure_c, graph_id, B, params,
        readout=False, matmul_dtype=jnp.float32)
    assert n_mu.shape == (N, graph_embedding_size)
    assert jnp.allclose(n_mu, r_h[:, :graph_embedding_size], atol=2e-4)
    assert jnp.allclose(n_lv, r_h[:, graph_embedding_size:], atol=2e-4)

    print("KERNEL_OK")
</pallas_src>

<mosaic_0001>
module attributes {stable_mosaic.version = 11 : i64} {
  func.func @_tree_lstm_level_kernel(%arg0: i32, %arg1: memref<16x48xf32, #tpu.memory_space<vmem>>, %arg2: memref<16x32xf32, #tpu.memory_space<vmem>>, %arg3: memref<16x32xf32, #tpu.memory_space<vmem>>, %arg4: memref<48x128xf32, #tpu.memory_space<vmem>>, %arg5: memref<32x128xf32, #tpu.memory_space<vmem>>, %arg6: memref<1x128xf32, #tpu.memory_space<vmem>>, %arg7: memref<8x128xf32, #tpu.memory_space<vmem>>) attributes {dimension_semantics = [#tpu.dimension_semantics<parallel>], iteration_bounds = array<i64: 3>, scalar_prefetch = 0 : i64, scratch_operands = 0 : i64, tpu.core_type = #tpu.core_type<tc>, window_params = [{transform_indices = @transform_0, window_bounds = array<i64: 16, 48>}, {transform_indices = @transform_1, window_bounds = array<i64: 16, 32>}, {transform_indices = @transform_2, window_bounds = array<i64: 16, 32>}, {pipeline_mode = #tpu.pipeline_mode<synchronous>, transform_indices = @transform_3, window_bounds = array<i64: 48, 128>}, {pipeline_mode = #tpu.pipeline_mode<synchronous>, transform_indices = @transform_4, window_bounds = array<i64: 32, 128>}, {pipeline_mode = #tpu.pipeline_mode<synchronous>, transform_indices = @transform_5, window_bounds = array<i64: 1, 128>}, {transform_indices = @transform_6, window_bounds = array<i64: 8, 128>}]} {
    %c0 = arith.constant 0 : index
    %c0_0 = arith.constant 0 : index
    %0 = vector.load %arg1[%c0, %c0_0] : memref<16x48xf32, #tpu.memory_space<vmem>>, vector<16x48xf32>
    %c0_1 = arith.constant 0 : index
    %c0_2 = arith.constant 0 : index
    %1 = vector.load %arg4[%c0_1, %c0_2] : memref<48x128xf32, #tpu.memory_space<vmem>>, vector<48x128xf32>
    %cst = arith.constant dense<0.000000e+00> : vector<16x128xf32>
    %2 = tpu.matmul %0, %1, %cst {dimension_numbers = #tpu.dot_dimension_numbers<[1], [0], [0], [1], [0, 0, 1, 1], [], []>} : vector<16x48xf32>, vector<48x128xf32>, vector<16x128xf32> -> vector<16x128xf32>
    %c0_3 = arith.constant 0 : index
    %c0_4 = arith.constant 0 : index
    %3 = vector.load %arg2[%c0_3, %c0_4] : memref<16x32xf32, #tpu.memory_space<vmem>>, vector<16x32xf32>
    %c0_5 = arith.constant 0 : index
    %c0_6 = arith.constant 0 : index
    %4 = vector.load %arg5[%c0_5, %c0_6] : memref<32x128xf32, #tpu.memory_space<vmem>>, vector<32x128xf32>
    %cst_7 = arith.constant dense<0.000000e+00> : vector<16x128xf32>
    %5 = tpu.matmul %3, %4, %cst_7 {dimension_numbers = #tpu.dot_dimension_numbers<[1], [0], [0], [1], [0, 0, 1, 1], [], []>} : vector<16x32xf32>, vector<32x128xf32>, vector<16x128xf32> -> vector<16x128xf32>
    %6 = arith.addf %2, %5 : vector<16x128xf32>
    %c0_8 = arith.constant 0 : index
    %c0_9 = arith.constant 0 : index
    %7 = vector.load %arg6[%c0_8, %c0_9] : memref<1x128xf32, #tpu.memory_space<vmem>>, vector<1x128xf32>
    %8 = vector.broadcast %7 : vector<1x128xf32> to vector<16x128xf32>
    %9 = arith.addf %6, %8 : vector<16x128xf32>
    %10 = arith.negf %9 : vector<16x128xf32>
    %11 = math.exp %10 : vector<16x128xf32>
    %cst_10 = arith.constant 1.000000e+00 : f32
    %12 = vector.broadcast %cst_10 : f32 to vector<16x128xf32>
    %13 = arith.addf %12, %11 : vector<16x128xf32>
    %14 = arith.divf %12, %13 : vector<16x128xf32>
    %15 = math.tanh %9 : vector<16x128xf32>
    %16 = vector.extract_strided_slice %14 {offsets = [0, 0], sizes = [16, 32], strides = [1, 1]} : vector<16x128xf32> to vector<16x32xf32>
    %17 = vector.extract_strided_slice %14 {offsets = [0, 32], sizes = [16, 32], strides = [1, 1]} : vector<16x128xf32> to vector<16x32xf32>
    %18 = vector.extract_strided_slice %15 {offsets = [0, 64], sizes = [16, 32], strides = [1, 1]} : vector<16x128xf32> to vector<16x32xf32>
    %19 = vector.extract_strided_slice %14 {offsets = [0, 96], sizes = [16, 32], strides = [1, 1]} : vector<16x128xf32> to vector<16x32xf32>
    %20 = arith.mulf %16, %18 : vector<16x32xf32>
    %c0_11 = arith.constant 0 : index
    %c0_12 = arith.constant 0 : index
    %21 = vector.load %arg3[%c0_11, %c0_12] : memref<16x32xf32, #tpu.memory_space<vmem>>, vector<16x32xf32>
    %22 = arith.mulf %19, %21 : vector<16x32xf32>
    %23 = arith.addf %20, %22 : vector<16x32xf32>
    %24 = math.tanh %23 : vector<16x32xf32>
    %25 = arith.mulf %17, %24 : vector<16x32xf32>
    %26 = vector.extract_strided_slice %25 {offsets = [0, 0], sizes = [8, 32], strides = [1, 1]} : vector<16x32xf32> to vector<8x32xf32>
    %27 = vector.extract_strided_slice %23 {offsets = [0, 0], sizes = [8, 32], strides = [1, 1]} : vector<16x32xf32> to vector<8x32xf32>
    %28 = vector.extract_strided_slice %25 {offsets = [8, 0], sizes = [8, 32], strides = [1, 1]} : vector<16x32xf32> to vector<8x32xf32>
    %29 = vector.extract_strided_slice %23 {offsets = [8, 0], sizes = [8, 32], strides = [1, 1]} : vector<16x32xf32> to vector<8x32xf32>
    %30 = tpu.concatenate %26, %27, %28, %29 in 1 : vector<8x32xf32>, vector<8x32xf32>, vector<8x32xf32>, vector<8x32xf32> -> vector<8x128xf32>
    %c0_13 = arith.constant 0 : index
    %c0_14 = arith.constant 0 : index
    %31 = vector.load %arg7[%c0_13, %c0_14] : memref<8x128xf32, #tpu.memory_space<vmem>>, vector<8x128xf32>
    tpu.vector_store %arg7[%c0_13, %c0_14], %30 {strides = array<i32>} : memref<8x128xf32, #tpu.memory_space<vmem>>, vector<8x128xf32>,
    return
  }
  func.func @transform_0(%arg0: i32) -> (i32, i32) {
    %c0_i32 = arith.constant 0 : i32
    %c0_i32_0 = arith.constant 0 : i32
    return %arg0, %c0_i32 : i32, i32
  }
  func.func @transform_1(%arg0: i32) -> (i32, i32) {
    %c0_i32 = arith.constant 0 : i32
    %c0_i32_0 = arith.constant 0 : i32
    return %arg0, %c0_i32 : i32, i32
  }
  func.func @transform_2(%arg0: i32) -> (i32, i32) {
    %c0_i32 = arith.constant 0 : i32
    %c0_i32_0 = arith.constant 0 : i32
    return %arg0, %c0_i32 : i32, i32
  }
  func.func @transform_3(%arg0: i32) -> (i32, i32) {
    %c0_i32 = arith.constant 0 : i32
    %c0_i32_0 = arith.constant 0 : i32
    %c0_i32_1 = arith.constant 0 : i32
    return %c0_i32, %c0_i32_0 : i32, i32
  }
  func.func @transform_4(%arg0: i32) -> (i32, i32) {
    %c0_i32 = arith.constant 0 : i32
    %c0_i32_0 = arith.constant 0 : i32
    %c0_i32_1 = arith.constant 0 : i32
    return %c0_i32, %c0_i32_0 : i32, i32
  }
  func.func @transform_5(%arg0: i32) -> (i32, i32) {
    %c0_i32 = arith.constant 0 : i32
    %c0_i32_0 = arith.constant 0 : i32
    %c0_i32_1 = arith.constant 0 : i32
    return %c0_i32, %c0_i32_0 : i32, i32
  }
  func.func @transform_6(%arg0: i32) -> (i32, i32) {
    %c0_i32 = arith.constant 0 : i32
    %c0_i32_0 = arith.constant 0 : i32
    return %arg0, %c0_i32 : i32, i32
  }
}

</mosaic_0001>

<bundles_post_ra>
// kernel: tpu_custom_call.1
= control target key start
LH: loop header
LB: loop body
LE: loop exit
PB: predicated region body
PF: predicated region fallthrough
CT: control target
= control target key end

     0   :  { %11 = vsyncpa [#allocation3], 0  ;;  %s909_s0 = inlined_call_operand.vmem [shape: f32[48,48], index: 0, kind: input, shape index: {}]   ;;  %s910_s1 = inlined_call_operand.vmem [shape: f32[48,32], index: 1, kind: input, shape index: {}]   ;;  %s911_s2 = inlined_call_operand.vmem [shape: f32[48,32], index: 2, kind: input, shape index: {}]   ;;  %s912_s3 = inlined_call_operand.vmem [shape: f32[48,128], index: 3, kind: input, shape index: {}]   ;;  %s913_s4 = inlined_call_operand.vmem [shape: f32[32,128], index: 4, kind: input, shape index: {}]   ;;  %s914_s5 = inlined_call_operand.vmem [shape: f32[1,128], index: 5, kind: input, shape index: {}]   ;;  %s915_s6 = inlined_call_operand.hbm [shape: f32[24,128], index: 6, kind: output, shape index: {}]  }
   0x1   :  { %13 = vsyncpa [#allocation3 + $0x1], 0  ;;  %s773_s21 = smov 0   ;;  %s775_s22 = smov 0  }
   0x2   :  { %s777_s23 = smov 0   ;;  %s779_s24 = smov 0  }
   0x3 LB: > { %s794_s25 = sadd.s32 4294967295, %s733_s24   ;;  %s581_s26 = sadd.s32 4294967294, %s733_s24   ;;  %s733_s24 = sphi %s779_s24, %s921_s24   ;;  %s729_s23 = sphi %s777_s23, %s920_s23   ;;  %s725_s22 = sphi %s775_s22, %s919_s22   ;;  %s721_s21 = sphi %s773_s21, %s918_s21  }
   0x4   : > { %s798_s27 = sadd.s32 1, %s733_s24   ;;  %s167_s28 = sadd.s32 1, %s729_s23 }
   0x5   : > { %s164_s29 = ssub.s32 %s733_s24, %s798_s27  ;;  %p177_p0 = scmp.ne.s32.totalorder %s729_s23, %s725_s22 }
   0x6   : > { %p165_p1 = scmp.eq.s32.totalorder %s164_s29, 0  ;;  %p178_p2 = scmp.eq.s32.totalorder %s794_s25, 2 }
   0x7   : > { %p183_p3 = scmp.ne.s32.totalorder %s725_s22, %s721_s21  ;;  %p184_p4 = scmp.eq.s32.totalorder %s581_s26, 2 }
   0x8   : > { %s809_s30 = scalar_select %p165_p1, %s729_s23, %s167_s28  }
   0x9   : > { %p811_p5 = por %p178_p2, %p177_p0  ;;  %p815_p6 = por %p184_p4, %p183_p3 }
   0xa   : > { %p584_p7 = scmp.ge.s32.totalorder %s733_s24, 1  ;;  %p238_p8 = scmp.lt.s32.totalorder %s733_s24, 4 }
   0xc   : > { %p239_p9 = pnand %p584_p7, %p238_p8 }
   0xd   : > { %s586_s15 = sshll.u32 (!%p239_p9), %s794_s25, 1  ;;  %s735_s10 = smov (!%p239_p9), 96  }
   0xe   : > { %242 = sbr.rel (%p239_p9) target bundleno = 539 (0x21b), region = 44  ;;  %p279_p10 = scmp.lt.s32.totalorder (!%p239_p9), %s586_s15, 5 }
   0xf   : > { %s736_s13 = smov (!%p239_p9), 64   ;;  %s737_s14 = smov (!%p239_p9), 32  }
  0x10   : > { %s275_s16 = sand.u32 (!%p239_p9), 1, %s725_s22   ;;  %s599_s18 = sshll.u32 (!%p239_p9), %s794_s25, 3 }
  0x11   : > { %s483_s25 = scalar_lea.sflag (!%p239_p9), [#allocation3], %s275_s16 }
  0x13   : > { %v303_v0 = vld [vmem:[%s912_s3 + $0x28] sm:$0xff]  ;;  %v302_v1 = vld [vmem:[%s912_s3 + $0x20] sm:$0xff]  ;;  %v309_v2 = vld [vmem:[%s913_s4 + $0x18] sm:$0xff]  ;;  %s923_s15 = smov (!%p279_p10, %s586_s15), 5  ;;  %vm310_vm0 = vcmask 261120   ;;  %vm340_vm1 = vcmask 392192  }
  0x14   : > { %357 = vmatpush.msra.mxu1 %v303_v0  ;;  %606 = vmatpush.msra.mxu2 %v303_v0  ;;  %v308_v3 = vld [vmem:[%s913_s4 + $0x10] sm:$0xff]  ;;  %v301_v4 = vld [vmem:[%s912_s3 + $0x18] sm:$0xff]  ;;  %v307_v5 = vld [vmem:[%s913_s4 + $0x8] sm:$0xff]  ;;  %s587_s11 = sshll.u32 %s923_s15, 3  ;;  %s493_s15 = scalar_lea.hbm %s915_s6, %s599_s18  ;;  %vm477_vm10 = vcmask 523264   ;;  %vm479_vm11 = vcmask 785408  }
  0x15   : > { %329 = vmatpush.msra.mxu0 %v309_v2  ;;  %602 = vmatpush.msra.mxu3 %v309_v2  ;;  %v300_v6 = vld [vmem:[%s912_s3 + $0x10] sm:$0xff]  ;;  %v306_v7 = vld [vmem:[%s913_s4] sm:$0xff]  ;;  %v299_v8 = vld [vmem:[%s912_s3 + $0x8] sm:$0xff]  ;;  %s288_s17 = scalar_lea.vmem %s910_s1, %s587_s11  ;;  %s282_s20 = scalar_lea.vmem %s909_s0, %s587_s11 }
  0x16   : > { %358 = vmatpush.msra.mxu1 %v302_v1  ;;  %607 = vmatpush.msra.mxu2 %v302_v1  ;;  %v304_v9 = vld [vmem:[%s288_s17] sm:$0xff]  ;;  %v305_v10 = vld [vmem:[%s288_s17 + $0x8] sm:$0xff]  ;;  %s294_s28 = scalar_lea.vmem %s911_s2, %s587_s11  ;;  %s585_s17 = sshll.u32 %s275_s16, 3 }
  0x17   : > { %330 = vmatpush.msra.mxu0 %v308_v3  ;;  %603 = vmatpush.msra.mxu3 %v308_v3  ;;  %v298_v11 = vld [vmem:[%s912_s3] sm:$0xff]  ;;  %v297_v13 = vld [vmem:[%s282_s20 + $0x8] sm:$0xff]  ;;  %s277_s26 = scalar_lea.vmem [#allocation2], %s585_s17  ;;  %s497_s29 = sshll.u32 %s493_s15, 4  ;;  %s498_s29 = int_to_ptr.hbm [resolvable:$true] %s497_s29 }
  0x18   : > { %359 = vmatpush.msra.mxu1 %v301_v4  ;;  %608 = vmatpush.msra.mxu2 %v301_v4  ;;  %v296_v12 = vld [vmem:[%s282_s20] sm:$0xff]  ;;  %v427_v15 = vld [vmem:[%s294_s28 + $0x8] sm:$0xff]  ;;  %s685_s9 = sshra.s32 %s498_s29, 4  ;;  %s686_s9 = int_to_ptr.hbm [resolvable:$true] %s685_s9 }
  0x19   : > { %331 = vmatpush.msra.mxu0 %v307_v5  ;;  %604 = vmatpush.msra.mxu3 %v307_v5  ;;  %v426_v14 = vld [vmem:[%s294_s28] sm:$0xff]  ;;  %s495_s28 = sshll.u32 %s277_s26, 4  ;;  %p692_p0 = scmp.lt.s32.totalorder %s686_s9, %s915_s6  ;;  %s496_s28 = int_to_ptr.vmem [resolvable:$true] %s495_s28 }
  0x1a   : > { %360 = vmatpush.msra.mxu1 %v300_v6  ;;  %609 = vmatpush.msra.mxu2 %v300_v6  ;;  %v654_v17 = vld [vmem:[%s914_s5] ss:$0 sm:$0xff] }
  0x1b   : > { %332 = vmatpush.msra.mxu0 %v306_v7  ;;  %605 = vmatpush.msra.mxu3 %v306_v7 }
  0x1c   : > { %361 = vmatpush.msra.mxu1 %v299_v8  ;;  %610 = vmatpush.msra.mxu2 %v299_v8 }
  0x1d   : > { %592 = vmatmul.msk.f32.vlgmr.msra.gmra.mxu0 %vm310_vm0, %v304_v9  ;;  %593 = vmatmul.msk.f32.vlgmr.msra.gmra.mxu3 %vm310_vm0, %v305_v10 }
  0x1e   : > { %362 = vmatpush.msra.mxu1 %v298_v11  ;;  %611 = vmatpush.msra.mxu2 %v298_v11 }
  0x1f   : > { %594 = vmatmul.msk.f32.vlgmr.msra.gmra.mxu1 %vm340_vm1, %v296_v12  ;;  %595 = vmatmul.msk.f32.vlgmr.msra.gmra.mxu2 %vm340_vm1, %v297_v13 }
  0x20   : > { %430 = vrot.lane.b32.xlu0 %v426_v14, %s735_s10 }
  0x28   : > { %432 = vrot.lane.b32.xlu0 %v427_v15, %s735_s10 }
  0x92   : > { %v431_v40 = vpop.permute.xlu0 %430 }
  0x9a   : > { %v334_v16 = vpop.f32.mrf.mxu0  ;;  %v433_v54 = vpop.permute.xlu0 %432 }
  0x9c   : > { %v364_v18 = vpop.f32.mrf.mxu1 }
  0x9d   : > { %v365_v19 = vadd.f32 %v364_v18, %v334_v16 }
  0x9f   : > { %v374_v20 = vadd.f32 %v654_v17, %v365_v19 }
  0xa0   : > { %v337_v21 = vpop.f32.mrf.mxu3 }
  0xa1   : > { %v596_v22 = vmul.f32 -1.442695, %v374_v20  ;;  %655 = vtanh.f32 %v374_v20 }
  0xa2   : > { %v367_v23 = vpop.f32.mrf.mxu2 }
  0xa3   : > { %657 = vpow2.f32 %v596_v22  ;;  %v368_v24 = vadd.f32 %v367_v23, %v337_v21 }
  0xa5   : > { %v375_v25 = vadd.f32 %v654_v17, %v368_v24 }
  0xa7   : > { %v656_v26 = vpop.eup %655  ;;  %v597_v27 = vmul.f32 -1.442695, %v375_v25  ;;  %659 = vtanh.f32 %v375_v25 }
  0xa8   : > { %418 = vrot.lane.b32.xlu1 %v656_v26, %s736_s13 }
  0xa9   : > { %v658_v28 = vpop.eup %657  ;;  %661 = vpow2.f32 %v597_v27 }
  0xaa   : > { %v382_v29 = vadd.f32 1.0, %v658_v28 }
  0xac   : > { %663 = vrcp.f32 %v382_v29  ;;  %v395_v36 = vand.u32 2147483648, %v382_v29  ;;  %v393_v38 = vand.u32 2147483647, %v382_v29  ;;  %vm389_vm3 = vweird.f32 %v382_v29 }
  0xad   : > { %v660_v30 = vpop.eup %659 }
  0xae   : > { %v396_v43 = vor.u32 1.1754944e-38, %v395_v36  ;;  %vm394_vm5 = vcmp.eq.f32.partialorder %v393_v38, 8.507059e+37 }
  0xaf   : > { %v662_v31 = vpop.eup %661 }
  0xb0   : > { %v383_v32 = vadd.f32 1.0, %v662_v31  ;;  %420 = vrot.lane.b32.xlu1 %v660_v30, %s736_s13  ;;  %s691_s13 = scalar_lea.hbm %s915_s6, 24 }
  0xb2   : > { %v664_v33 = vpop.eup %663  ;;  %665 = vrcp.f32 %v383_v32  ;;  %v410_v47 = vand.u32 2147483648, %v383_v32  ;;  %v408_v50 = vand.u32 2147483647, %v383_v32  ;;  %vm404_vm7 = vweird.f32 %v383_v32 }
  0xb3   : > { %v385_v34 = vmul.f32 %v664_v33, %v382_v29  ;;  %vm390_vm2 = vweird.f32 %v664_v33 }
  0xb4   : > { %vm391_vm4 = vmor %vm389_vm3, %vm390_vm2  ;;  %v411_v52 = vor.u32 1.1754944e-38, %v410_v47  ;;  %vm409_vm9 = vcmp.eq.f32.partialorder %v408_v50, 8.507059e+37 }
  0xb5   : > { %v386_v35 = vsub.f32 1.0, %v385_v34 }
  0xb7   : > { %v387_v37 = vmul.f32 %v664_v33, %v386_v35 }
  0xb8   : > { %v666_v39 = vpop.eup %665 }
  0xb9   : > { %v388_v41 = vadd.f32 %v664_v33, %v387_v37  ;;  %v400_v42 = vmul.f32 %v666_v39, %v383_v32  ;;  %vm405_vm6 = vweird.f32 %v666_v39 }
  0xba   : > { %vm406_vm8 = vmor %vm404_vm7, %vm405_vm6 }
  0xbb   : > { %v392_v44 = vsel %vm391_vm4, %v664_v33, %v388_v41  ;;  %v401_v45 = vsub.f32 1.0, %v400_v42 }
  0xbc   : > { %v397_v46 = vsel %vm394_vm5, %v396_v43, %v392_v44 }
  0xbd   : > { %v436_v48 = vmul.f32 %v431_v40, %v397_v46  ;;  %v402_v49 = vmul.f32 %v666_v39, %v401_v45 }
  0xbf   : > { %440 = vrot.lane.b32.xlu2 %v436_v48, %s737_s14  ;;  %v403_v51 = vadd.f32 %v666_v39, %v402_v49 }
  0xc1   : > { %v407_v53 = vsel %vm406_vm8, %v666_v39, %v403_v51 }
  0xc2   : > { %v412_v55 = vsel %vm409_vm9, %v411_v52, %v407_v53 }
  0xc3   : > { %v437_v56 = vmul.f32 %v433_v54, %v412_v55 }
  0xc7   : > { %442 = vrot.lane.b32.xlu2 %v437_v56, %s737_s14 }
 0x119   : > { %v441_v57 = vpop.permute.xlu2 %440 }
 0x11a   : > { %v419_v58 = vpop.permute.xlu1 %418 }
 0x11b   : > { %v424_v59 = vmul.f32 %v419_v58, %v397_v46 }
 0x11d   : > { %v446_v60 = vadd.f32 %v441_v57, %v424_v59 }
 0x11f   : > { %667 = vtanh.f32 %v446_v60 }
 0x121   : > { %v443_v63 = vpop.permute.xlu2 %442 }
 0x122   : > { %v421_v61 = vpop.permute.xlu1 %420 }
 0x123   : > { %v425_v62 = vmul.f32 %v421_v61, %v412_v55 }
 0x125   : > { %v668_v0 = vpop.eup %667  ;;  %v447_v1 = vadd.f32 %v443_v63, %v425_v62 }
 0x126   : > { %452 = vrot.lane.b32.xlu0 %v668_v0, %s737_s14 }
 0x127   : > { %669 = vtanh.f32 %v447_v1 }
 0x12d   : > { %v670_v2 = vpop.eup %669 }
 0x12e   : > { %454 = vrot.lane.b32.xlu1 %v670_v2, %s737_s14  ;;  %465 = vrot.lane.b32.xlu0 %v446_v60, %s737_s14 }
 0x198   : > { %v453_v3 = vpop.permute.xlu0 %452 }
 0x199   : > { %v458_v4 = vmul.f32 %v453_v3, %v397_v46 }
 0x19b   : > { %461 = vrot.lane.b32.xlu2 %v458_v4, %s735_s10 }
 0x1a0   : > { %v455_v5 = vpop.permute.xlu1 %454  ;;  %v466_v8 = vpop.permute.xlu0 %465 }
 0x1a1   : > { %v459_v6 = vmul.f32 %v455_v5, %v412_v55 }
 0x1a3   : > { %469 = vrot.lane.b32.xlu1 %v459_v6, %s737_s14  ;;  %473 = vrot.lane.b32.xlu2 %v447_v1, %s735_s10  ;;  %s687_s10 = scalar_lea.hbm %s686_s9, 8 }
 0x1a4   : > { %p688_p11 = scmp.ne.s32.totalorder %s686_s9, %s687_s10  ;;  %p693_p1 = scmp.lt.s32.totalorder %s691_s13, %s687_s10 }
 0x1a6   : > { %p689_p12 = pnand %p688_p11, %p811_p5  ;;  %p694_p2 = por %p693_p1, %p692_p0 }
 0x1a8   : > { %p690_p13 = pneg %p689_p12 }
 0x1aa   : > { %p695_p3 = pnand %p694_p2, %p690_p13 }
 0x1f5   : > { %v462_v7 = vpop.permute.xlu2 %461 }
 0x1f6   : > { %v476_v9 = vsel %vm310_vm0, %v462_v7, %v466_v8 }
 0x1fd   : > { %v474_v11 = vpop.permute.xlu2 %473 }
 0x215   : > { %v470_v10 = vpop.permute.xlu1 %469 }
 0x216   : > { %v478_v12 = vsel %vm477_vm10, %v476_v9, %v470_v10 }
 0x217   : > { %v480_v13 = vsel %vm479_vm11, %v478_v12, %v474_v11 }
 0x218   : > { %481 = vst [vmem:[%s277_s26] sm:$0xff] %v480_v13 }
 0x219   : > { %698 = shalt.err (!%p695_p3)
}
 0x21a   : > { %612 = dma.vmem_to_hbm [thread:$0]  (%p811_p5), %s496_s28, 128, %s498_s29, %s483_s25  }
 0x21b PF: > { %p618_p4 = scmp.ge.s32.totalorder %s733_s24, 2  ;;  %s509_s16 = sand.u32 1, %s721_s21  }
 0x21c   : > { %s510_s18 = scalar_lea.sflag [#allocation3], %s509_s16 }
 0x21d   : > { %p615_p7 = pnand %p618_p4, %p815_p6 }
 0x21f   : > { %p616_p8 = pneg %p615_p7 }
 0x221   : > { %716 = dma.done.wait (%p616_p8), %s510_s18, 128  }
 0x222   : > { %718 = vsyncadd (%p616_p8), %s510_s18, 4294967168  ;;  %p16_p9 = scmp.ge.s32.totalorder %s798_s27, 5   ;;  %s918_s21 = smov %s725_s22 }
 0x223   : > { %s919_s22 = smov %s729_s23  ;;  %s920_s23 = smov %s809_s30 }
 0x224   : > { %s921_s24 = smov %s798_s27  ;;  %18 = sbr.rel (!%p16_p9) target bundleno = 3 (0x3), region = 85 }
 0x229   :  { %516 = vsyncpa [#allocation3], 1 }
 0x22a   :  { %518 = vsyncpa [#allocation3 + $0x1], 1 }

</bundles_post_ra>
